<compile_context>
chip_gen: v6e
topology: v6e:2x2x1
jax: 0.10.0
libtpu: 0.0.40
codegen_flags: <defaults>
</compile_context>

<pallas_src>
import functools

import jax
import jax.numpy as jnp
from jax.experimental import pallas as pl
from jax.experimental.pallas import tpu as pltpu

LANE = 128      # feature-dim padding (lane width)
SUBLANE = 16    # batch-tile padding (covers bf16 sublane packing; also fine for f32)


def _round_up(n: int, m: int) -> int:
    return ((n + m - 1) // m) * m


def _mlp_kernel(x_ref, w_ref, b_ref, o_ref, h_ref, *, out_p: int):
    """grid = (batch_tiles, n_layers); layer axis is innermost ("arbitrary").

    x_ref: (TB, D)   compute dtype  -- resident across the layer axis (fetched once per tile)
    w_ref: (1, D, D) compute dtype  -- layer l's zero-padded weight (streamed per layer step)
    b_ref: (1, 1, D) f32            -- layer l's zero-padded bias
    o_ref: (TB, out_p) x.dtype      -- written only on the last layer step
    h_ref: (TB, D)   compute dtype  -- VMEM scratch: activation carried across layers
    """
    l = pl.program_id(1)
    n_l = pl.num_programs(1)

    @pl.when(l == 0)
    def _():
        h_ref[...] = x_ref[...]

    # MXU matmul, f32 accumulation; bias broadcast (1, D) over the batch tile.
    y = jnp.dot(h_ref[...], w_ref[0], preferred_element_type=jnp.float32) + b_ref[0]

    @pl.when(l < n_l - 1)
    def _():
        h_ref[...] = jnp.maximum(y, 0.0).astype(h_ref.dtype)   # ReLU, back to compute dtype

    @pl.when(l == n_l - 1)
    def _():
        o_ref[...] = y[:, :out_p].astype(o_ref.dtype)           # final Linear: no ReLU


def init_fully_connected_params(key, input_size, output_size, hidden_size,
                                n_hidden_layers, dtype=jnp.float32):
    """Raw Linear params, already in (In, Out) layout (matmul-ready, no transpose in kernel)."""
    sizes = [(input_size, hidden_size)]
    sizes += [(hidden_size, hidden_size)] * n_hidden_layers
    sizes += [(hidden_size, output_size)]
    params = []
    for fan_in, fan_out in sizes:
        key, kw, kb = jax.random.split(key, 3)
        bound = 1.0 / float(fan_in) ** 0.5
        w = jax.random.uniform(kw, (fan_in, fan_out), dtype, -bound, bound)
        b = jax.random.uniform(kb, (fan_out,), dtype, -bound, bound)
        params.append((w, b))
    return params


def pack_fully_connected_params(params, compute_dtype=jnp.bfloat16):
    """One-time packing (call at init, NOT per forward): zero-pad every layer to a common
    square (D, D), cast weights to the compute dtype, and stack.
    Returns w_stacked (L, D, D) compute_dtype, b_stacked (L, 1, D) f32."""
    dims = [w.shape[0] for (w, _) in params] + [params[-1][0].shape[1]]
    d = max(_round_up(s, LANE) for s in dims)
    n_layers = len(params)
    w_st = jnp.zeros((n_layers, d, d), compute_dtype)
    b_st = jnp.zeros((n_layers, 1, d), jnp.float32)
    for i, (w, b) in enumerate(params):
        fi, fo = w.shape
        w_st = w_st.at[i, :fi, :fo].set(w.astype(compute_dtype))
        b_st = b_st.at[i, 0, :fo].set(b.astype(jnp.float32))
    return w_st, b_st


@functools.partial(jax.jit, static_argnames=("output_size", "block_batch"))
def fully_connected_forward(x, w_stacked, b_stacked, *, output_size, block_batch=512):
    """y = W_L(... ReLU(W_2 ReLU(W_1 x + b_1) + b_2) ...) + b_L, as one fused pallas_call."""
    n_layers, d, _ = w_stacked.shape
    B, in_size = x.shape
    out_p = _round_up(output_size, LANE)
    compute_dtype = w_stacked.dtype

    # Batch tiling with minimal padding: tb <= block_batch, b_p = n_b * tb.
    n_b = (B + block_batch - 1) // block_batch
    tb = _round_up((B + n_b - 1) // n_b, SUBLANE)
    b_p = n_b * tb

    # Pad/cast only the activations per call (zero padding is exact; padded lanes/rows
    # multiply zero weight rows and padded batch rows are sliced off below).
    if (B, in_size) == (b_p, d) and x.dtype == compute_dtype:
        x_p = x
    else:
        x_p = jnp.zeros((b_p, d), compute_dtype).at[:B, :in_size].set(
            x.astype(compute_dtype))

    # VMEM budget: double-buffered tiles + activation scratch, with headroom, clipped
    # below physical VMEM (v5e/v6e: 128 MiB, v7x: 64 MiB per TensorCore).
    csize = jnp.dtype(compute_dtype).itemsize
    osize = jnp.dtype(x.dtype).itemsize
    resident = (2 * (tb * d * csize            # x tile (double-buffered)
                     + d * d * csize           # weight (double-buffered = layer prefetch)
                     + d * 4                   # bias
                     + tb * out_p * osize)     # out tile
                + tb * d * csize)              # activation scratch
    try:
        phys_vmem = getattr(pltpu.get_tpu_info(), "vmem_capacity_bytes", 64 << 20)
    except Exception:
        phys_vmem = 64 << 20
    vmem_limit = int(min(max(resident + (8 << 20), 32 << 20), int(phys_vmem * 3 // 4)))

    out = pl.pallas_call(
        functools.partial(_mlp_kernel, out_p=out_p),
        out_shape=jax.ShapeDtypeStruct((b_p, out_p), x.dtype),
        grid=(n_b, n_layers),
        in_specs=[
            pl.BlockSpec((tb, d), lambda b, l: (b, 0)),        # x: resident across layers
            pl.BlockSpec((1, d, d), lambda b, l: (l, 0, 0)),   # weights: streamed per layer
            pl.BlockSpec((1, 1, d), lambda b, l: (l, 0, 0)),   # biases: streamed per layer
        ],
        out_specs=pl.BlockSpec((tb, out_p), lambda b, l: (b, 0)),
        scratch_shapes=[pltpu.VMEM((tb, d), compute_dtype)],
        compiler_params=pltpu.CompilerParams(
            dimension_semantics=("parallel", "arbitrary"),
            vmem_limit_bytes=vmem_limit,
        ),
        # TODO(synk): for hidden sizes where one (D, D) weight tile double-buffered no longer
        # fits the per-generation VMEM budget (D >~ 3-4K bf16 on v7x), add K/N weight tiling
        # (256-multiple tiles for the v6e/v7x MXU) with an f32 accumulator scratch; also split
        # the first/last layers out of the square padding if input/output >> hidden.
    )(x_p, w_stacked, b_stacked)

    return out[:B, :output_size]


if __name__ == "__main__":
    # Small shapes consistent with the module's forward.
    batch = 2
    input_size = 16
    hidden_size = 32
    output_size = 8
    n_hidden_layers = 2

    key = jax.random.PRNGKey(0)
    key, kx = jax.random.split(key)
    x = jax.random.normal(kx, (batch, input_size), jnp.float32)

    params = init_fully_connected_params(
        key, input_size, output_size, hidden_size, n_hidden_layers)
    # One-time weight formatting (pad + cast + stack), outside the per-call path.
    w_stacked, b_stacked = pack_fully_connected_params(params, compute_dtype=jnp.bfloat16)

    out = fully_connected_forward(x, w_stacked, b_stacked, output_size=output_size)
    out = jax.block_until_ready(out)

    # Pure-JAX f32 reference (weights already (In, Out)).
    ref = x
    for i, (w, b) in enumerate(params):
        ref = ref @ w + b
        if i < len(params) - 1:
            ref = jnp.maximum(ref, 0.0)

    assert out.shape == (batch, output_size)
    # Kernel uses bf16 operands (f32 accumulation), so compare with loose tolerance.
    assert jnp.allclose(out, ref, atol=3e-2, rtol=3e-2), (
        f"max abs diff {jnp.max(jnp.abs(out - ref))}")

    print("KERNEL_OK")
</pallas_src>

<mosaic_0001>
module attributes {stable_mosaic.version = 11 : i64} {
  func.func @_mlp_kernel(%arg0: i32, %arg1: i32, %arg2: memref<16x128xbf16, #tpu.memory_space<vmem>>, %arg3: memref<1x128x128xbf16, #tpu.memory_space<vmem>>, %arg4: memref<1x1x128xf32, #tpu.memory_space<vmem>>, %arg5: memref<16x128xf32, #tpu.memory_space<vmem>>, %arg6: memref<16x128xbf16, #tpu.memory_space<vmem>>) attributes {dimension_semantics = [#tpu.dimension_semantics<parallel>, #tpu.dimension_semantics<arbitrary>], iteration_bounds = array<i64: 1, 4>, scalar_prefetch = 0 : i64, scratch_operands = 1 : i64, tpu.core_type = #tpu.core_type<tc>, window_params = [{transform_indices = @transform_0, window_bounds = array<i64: 16, 128>}, {transform_indices = @transform_1, window_bounds = array<i64: 1, 128, 128>}, {transform_indices = @transform_2, window_bounds = array<i64: 1, 1, 128>}, {transform_indices = @transform_3, window_bounds = array<i64: 16, 128>}]} {
    %c0_i32 = arith.constant 0 : i32
    %0 = arith.cmpi eq, %arg1, %c0_i32 : i32
    %1 = arith.extui %0 : i1 to i32
    %c0_i32_0 = arith.constant 0 : i32
    %2 = arith.cmpi ne, %1, %c0_i32_0 : i32
    scf.if %2 {
      %c0_11 = arith.constant 0 : index
      %c0_12 = arith.constant 0 : index
      %17 = vector.load %arg2[%c0_11, %c0_12] : memref<16x128xbf16, #tpu.memory_space<vmem>>, vector<16x128xbf16>
      %c0_13 = arith.constant 0 : index
      %c0_14 = arith.constant 0 : index
      %18 = vector.load %arg6[%c0_13, %c0_14] : memref<16x128xbf16, #tpu.memory_space<vmem>>, vector<16x128xbf16>
      tpu.vector_store %arg6[%c0_13, %c0_14], %17 {strides = array<i32>} : memref<16x128xbf16, #tpu.memory_space<vmem>>, vector<16x128xbf16>,
    } else {
    }
    %c0 = arith.constant 0 : index
    %c0_1 = arith.constant 0 : index
    %3 = vector.load %arg6[%c0, %c0_1] : memref<16x128xbf16, #tpu.memory_space<vmem>>, vector<16x128xbf16>
    %c0_2 = arith.constant 0 : index
    %c0_3 = arith.constant 0 : index
    %c0_4 = arith.constant 0 : index
    %4 = vector.load %arg3[%c0_2, %c0_3, %c0_4] : memref<1x128x128xbf16, #tpu.memory_space<vmem>>, vector<1x128x128xbf16>
    %5 = vector.shape_cast %4 : vector<1x128x128xbf16> to vector<128x128xbf16>
    %cst = arith.constant dense<0.000000e+00> : vector<16x128xf32>
    %6 = tpu.matmul %3, %5, %cst {dimension_numbers = #tpu.dot_dimension_numbers<[1], [0], [0], [1], [0, 0, 1, 1], [], []>} : vector<16x128xbf16>, vector<128x128xbf16>, vector<16x128xf32> -> vector<16x128xf32>
    %c0_5 = arith.constant 0 : index
    %c0_6 = arith.constant 0 : index
    %c0_7 = arith.constant 0 : index
    %7 = vector.load %arg4[%c0_5, %c0_6, %c0_7] : memref<1x1x128xf32, #tpu.memory_space<vmem>>, vector<1x1x128xf32>
    %8 = vector.shape_cast %7 : vector<1x1x128xf32> to vector<1x128xf32>
    %9 = vector.broadcast %8 : vector<1x128xf32> to vector<16x128xf32>
    %10 = arith.addf %6, %9 : vector<16x128xf32>
    %c3_i32 = arith.constant 3 : i32
    %11 = arith.cmpi slt, %arg1, %c3_i32 : i32
    %12 = arith.extui %11 : i1 to i32
    %c0_i32_8 = arith.constant 0 : i32
    %13 = arith.cmpi ne, %12, %c0_i32_8 : i32
    scf.if %13 {
      %cst_11 = arith.constant 0.000000e+00 : f32
      %17 = vector.broadcast %cst_11 : f32 to vector<16x128xf32>
      %18 = arith.maximumf %10, %17 : vector<16x128xf32>
      %19 = arith.truncf %18 : vector<16x128xf32> to vector<16x128xbf16>
      %c0_12 = arith.constant 0 : index
      %c0_13 = arith.constant 0 : index
      %20 = vector.load %arg6[%c0_12, %c0_13] : memref<16x128xbf16, #tpu.memory_space<vmem>>, vector<16x128xbf16>
      tpu.vector_store %arg6[%c0_12, %c0_13], %19 {strides = array<i32>} : memref<16x128xbf16, #tpu.memory_space<vmem>>, vector<16x128xbf16>,
    } else {
    }
    %c3_i32_9 = arith.constant 3 : i32
    %14 = arith.cmpi eq, %arg1, %c3_i32_9 : i32
    %15 = arith.extui %14 : i1 to i32
    %c0_i32_10 = arith.constant 0 : i32
    %16 = arith.cmpi ne, %15, %c0_i32_10 : i32
    scf.if %16 {
      %c0_11 = arith.constant 0 : index
      %c0_12 = arith.constant 0 : index
      %17 = vector.load %arg5[%c0_11, %c0_12] : memref<16x128xf32, #tpu.memory_space<vmem>>, vector<16x128xf32>
      tpu.vector_store %arg5[%c0_11, %c0_12], %10 {strides = array<i32>} : memref<16x128xf32, #tpu.memory_space<vmem>>, vector<16x128xf32>,
    } else {
    }
    return
  }
  func.func @transform_0(%arg0: i32, %arg1: i32) -> (i32, i32) {
    %c0_i32 = arith.constant 0 : i32
    %c0_i32_0 = arith.constant 0 : i32
    return %arg0, %c0_i32 : i32, i32
  }
  func.func @transform_1(%arg0: i32, %arg1: i32) -> (i32, i32, i32) {
    %c0_i32 = arith.constant 0 : i32
    %c0_i32_0 = arith.constant 0 : i32
    %c0_i32_1 = arith.constant 0 : i32
    return %arg1, %c0_i32, %c0_i32_0 : i32, i32, i32
  }
  func.func @transform_2(%arg0: i32, %arg1: i32) -> (i32, i32, i32) {
    %c0_i32 = arith.constant 0 : i32
    %c0_i32_0 = arith.constant 0 : i32
    %c0_i32_1 = arith.constant 0 : i32
    return %arg1, %c0_i32, %c0_i32_0 : i32, i32, i32
  }
  func.func @transform_3(%arg0: i32, %arg1: i32) -> (i32, i32) {
    %c0_i32 = arith.constant 0 : i32
    %c0_i32_0 = arith.constant 0 : i32
    return %arg0, %c0_i32 : i32, i32
  }
}

</mosaic_0001>

<bundles_post_ra>
// kernel: fully_connected_forward.1
= control target key start
LH: loop header
LB: loop body
LE: loop exit
PB: predicated region body
PF: predicated region fallthrough
CT: control target
= control target key end

     0   :  { %8 = vsyncpa [#allocation4], 0  ;;  %s852_s0 = inlined_call_operand.vmem [shape: bf16[16,128], index: 0, kind: input, shape index: {}]   ;;  %s853_s1 = inlined_call_operand.hbm [shape: bf16[4,128,128], index: 1, kind: input, shape index: {}]   ;;  %s854_s2 = inlined_call_operand.vmem [shape: f32[4,1,128], index: 2, kind: input, shape index: {}]   ;;  %s855_s3 = inlined_call_operand.vmem [shape: f32[16,128], index: 3, kind: output, shape index: {}]  }
   0x1   :  { %10 = vsyncpa [#allocation4 + $0x1], 0  ;;  %s726_s12 = smov 0   ;;  %s728_s13 = smov 0  }
   0x2   :  { %s730_s14 = smov 0   ;;  %s732_s15 = smov 0  }
   0x3   :  { %s734_s16 = smov 0   ;;  %s736_s17 = smov 0  }
   0x4 LB: > { %s488_s18 = sadd.s32 4294967295, %s699_s17   ;;  %s25_s19 = sadd.s32 1, %s695_s16  ;;  %s699_s17 = sphi %s736_s17, %s16_s17   ;;  %s695_s16 = sphi %s734_s16, %s863_s16   ;;  %s691_s15 = sphi %s732_s15, %s862_s15   ;;  %s687_s14 = sphi %s730_s14, %s861_s14   ;;  %s683_s13 = sphi %s728_s13, %s860_s13   ;;  %s679_s12 = sphi %s726_s12, %s859_s12  }
   0x5   : > { %p26_p0 = scmp.ge.s32.totalorder %s25_s19, 4  ;;  %s61_s20 = sadd.s32 1, %s687_s14 }
   0x6   : > { %p68_p1 = scmp.ne.s32.totalorder %s687_s14, %s683_s13  ;;  %p69_p2 = scmp.eq.s32.totalorder %s699_s17, 0 }
   0x7   : > { %s865_s19 = smov (%p26_p0, %s25_s19), 0  ;;  %p74_p4 = scmp.ne.s32.totalorder %s683_s13, %s679_s12 }
   0x8   : > { %p762_p3 = por %p69_p2, %p68_p1  ;;  %s58_s22 = ssub.s32 %s695_s16, %s865_s19 }
   0x9   : > { %p75_p5 = scmp.eq.s32.totalorder %s488_s18, 0  ;;  %p59_p6 = scmp.eq.s32.totalorder %s58_s22, 0 }
   0xa   : > { %p559_p8 = scmp.lt.s32.totalorder %s699_s17, 4  ;;  %s159_s25 = sand.u32 1, %s687_s14  }
   0xb   : > { %p769_p7 = por %p75_p5, %p74_p4  ;;  %s516_s26 = sshll.u32 %s695_s16, 10 }
   0xc   : > { %s775_s24 = scalar_select %p59_p6, %s687_s14, %s61_s20  }
   0xd   : > { %s492_s27 = sshll.u32 %s159_s25, 6  ;;  %s169_s30 = scalar_lea.hbm %s853_s1, %s516_s26 }
   0xe   : > { %s163_s4 = scalar_lea.vmem [#allocation3], %s492_s27  ;;  %p784_p9 = pnand %p559_p8, %p762_p3 }
   0xf   : > { %s170_s5 = sshll.u32 %s163_s4, 4  ;;  %s160_s7 = scalar_lea.sflag [#allocation4], %s159_s25  ;;  %s171_s5 = int_to_ptr.vmem [resolvable:$true] %s170_s5 }
  0x10   : > { %p623_p10 = pneg %p784_p9  ;;  %s634_s8 = scalar_lea.vmem %s171_s5, 1024 }
  0x11   : > { %p635_p11 = scmp.ne.s32.totalorder %s171_s5, %s634_s8  ;;  %s701_s9 = smov [#allocation3]  }
  0x12   : > { %s639_s10 = sshll.u32 %s701_s9, 4  ;;  %s640_s10 = int_to_ptr.vmem [resolvable:$false] %s639_s10 }
  0x13   : > { %p637_p12 = pnand %p635_p11, %p623_p10  ;;  %s641_s11 = scalar_lea.vmem %s640_s10, 2048 }
  0x14   : > { %p642_p0 = scmp.lt.s32.totalorder %s171_s5, %s640_s10  ;;  %p643_p1 = scmp.lt.s32.totalorder %s641_s11, %s634_s8 }
  0x15   : > { %p638_p13 = pneg %p637_p12 }
  0x16   : > { %p644_p2 = por %p643_p1, %p642_p0 }
  0x18   : > { %p645_p3 = pnand %p644_p2, %p638_p13 }
  0x1a   : > { %648 = shalt.err (!%p645_p3)
}
  0x1b   : > { %s702_s12 = smov 64   ;;  %s703_s18 = smov 4  }
  0x1c   : > { %558 = dma.hbm_to_vmem [thread:$0]  (!%p784_p9), %s169_s30, 1024, %s171_s5, %s160_s7, %s702_s12, %s702_s12, %s703_s18  }
  0x1d   : > { %p495_p4 = scmp.ge.s32.totalorder %s699_s17, 1  ;;  %p184_p5 = scmp.lt.s32.totalorder %s699_s17, 5 }
  0x1f   : > { %p185_p6 = pnand %p495_p4, %p184_p5 }
  0x20   : > { %s190_s20 = sand.u32 (!%p185_p6), 1, %s683_s13  }
  0x21   : > { %188 = sbr.rel (%p185_p6) target bundleno = 294 (0x126), region = 32  ;;  %s496_s21 = sshll.u32 (!%p185_p6), %s190_s20, 6 }
  0x22   : > { %s191_s22 = scalar_lea.sflag (!%p185_p6), [#allocation4], %s190_s20  ;;  %s795_s25 = scalar_lea.vmem (!%p185_p6), [#allocation3], %s496_s21 }
  0x26   : > { %674 = dma.done.wait (%p769_p7), %s191_s22, 1024  }
  0x27   : > { %676 = vsyncadd (%p769_p7), %s191_s22, 4294966272  ;;  %p231_p8 = scmp.lt.s32.totalorder %s691_s15, 3  ;;  %p497_p9 = scmp.ne.s32.totalorder %s691_s15, 0 }
  0x29   : > { %s803_s26 = scalar_select %p231_p8, %s691_s15, 3 }
  0x2a   : > { %244 = sbr.rel (%p497_p9) target bundleno = 49 (0x31), region = 40 }
  0x2b   : > { %s233_s29 = scalar_lea.vmem %s854_s2, %s803_s26 }
  0x2f   : > { %v245_v0 = vld [vmem:[%s852_s0] sm:$0xff]  }
  0x30   : > { %247 = vst [vmem:[#allocation2] sm:$0xff] %v245_v0  }
  0x31 PF: > { %v612_v1 = vld [vmem:[%s795_s25 + $0x38] sm:$0xff]   ;;  %v704_v2 = vmov 0.0   ;;  %v613_v3 = vld [vmem:[%s795_s25 + $0x30] sm:$0xff]   ;;  %vm705_vm0 = vmmov 0   ;;  %v614_v4 = vld [vmem:[%s795_s25 + $0x28] sm:$0xff]   ;;  %p508_p7 = scmp.ge.s32.totalorder %s691_s15, 3 }
  0x32   : > { %533 = vmatprep.subr.bf16.mxu0 %v704_v2  ;;  %549 = vmatprep.mubr.msk.bf16.mxu0 %vm705_vm0, %v704_v2  ;;  %v615_v5 = vld [vmem:[%s795_s25 + $0x20] sm:$0xff]   ;;  %v616_v6 = vld [vmem:[%s795_s25 + $0x18] sm:$0xff]   ;;  %v617_v7 = vld [vmem:[%s795_s25 + $0x10] sm:$0xff]  }
  0x33   : > { %534 = vmatpush3.bf16.msra.mxu0 %v612_v1  ;;  %v618_v8 = vld [vmem:[%s795_s25 + $0x8] sm:$0xff]   ;;  %v619_v9 = vld [vmem:[%s795_s25] sm:$0xff]   ;;  %v498_v11 = vld [vmem:[%s233_s29] ss:$0 sm:$0xff] }
  0x34   : > { %535 = vmatprep.subr.bf16.mxu0 %v704_v2 }
  0x37   : > { %536 = vmatpush3.bf16.msra.mxu0 %v613_v3  ;;  %v620_v10 = vld [vmem:[#allocation2] sm:$0xff]  }
  0x38   : > { %537 = vmatprep.subr.bf16.mxu0 %v704_v2 }
  0x3b   : > { %538 = vmatpush3.bf16.msra.mxu0 %v614_v4 }
  0x3c   : > { %539 = vmatprep.subr.bf16.mxu0 %v704_v2 }
  0x3f   : > { %540 = vmatpush3.bf16.msra.mxu0 %v615_v5 }
  0x40   : > { %541 = vmatprep.subr.bf16.mxu0 %v704_v2 }
  0x43   : > { %542 = vmatpush3.bf16.msra.mxu0 %v616_v6 }
  0x44   : > { %543 = vmatprep.subr.bf16.mxu0 %v704_v2 }
  0x47   : > { %544 = vmatpush3.bf16.msra.mxu0 %v617_v7 }
  0x48   : > { %545 = vmatprep.subr.bf16.mxu0 %v704_v2 }
  0x4b   : > { %546 = vmatpush3.bf16.msra.mxu0 %v618_v8 }
  0x4c   : > { %547 = vmatprep.subr.bf16.mxu0 %v704_v2 }
  0x4f   : > { %548 = vmatpush3.bf16.msra.mxu0 %v619_v9 }
  0x52   : > { %550 = vmatmul.mubr.bf16.vlgmr.msra.gmra.mxu0 %v620_v10 }
 0x112   : > { %v362_v12 = vpop.f32.mrf.mxu0 }
 0x113   : > { %v363_v13 = vadd.f32 %v498_v11, %v362_v12 }
 0x114   : > { %v551_v14 = vpop.f32.mrf.mxu0  ;;  %372 = sbr.rel (%p508_p7) target bundleno = 286 (0x11e), region = 44 }
 0x116   : > { %v365_v15 = vpop.f32.mrf.mxu0 }
 0x117   : > { %v366_v16 = vadd.f32 %v498_v11, %v365_v15 }
 0x118   : > { %v552_v17 = vpop.f32.mrf.mxu0 }
 0x119   : > { %v373_v18 = vmax.f32 %v363_v13, 0.0  ;;  %v374_v19 = vmax.f32 %v366_v16, 0.0 }
 0x11b   : > { %v522_v20 = vpack.c.bf16 %v374_v19, %v373_v18 }
 0x11d   : > { %523 = vst [vmem:[#allocation2] sm:$0xff] %v522_v20  }
 0x11e PF: > { %p511_p10 = scmp.ne.s32.totalorder %s691_s15, 3 }
 0x120   : > { %388 = sbr.rel (%p511_p10) target bundleno = 294 (0x126), region = 48 }
 0x125   : > { %389 = vst [vmem:[%s855_s3] sm:$0xff] %v363_v13  ;;  %390 = vst [vmem:[%s855_s3 + $0x8] sm:$0xff] %v366_v16 }
 0x126 PF: > { %s16_s17 = sadd.s32 1, %s699_s17   ;;  %s859_s12 = smov %s683_s13 }
 0x127   : > { %p13_p11 = scmp.ge.s32.totalorder %s16_s17, 6   ;;  %s860_s13 = smov %s687_s14 }
 0x128   : > { %s861_s14 = smov %s775_s24  ;;  %s862_s15 = smov %s695_s16 }
 0x129   : > { %s863_s16 = smov %s865_s19  ;;  %15 = sbr.rel (!%p13_p11) target bundleno = 4 (0x4), region = 90 }
 0x12e   :  { %413 = vsyncpa [#allocation4], 1 }
 0x12f   :  { %415 = vsyncpa [#allocation4 + $0x1], 1 }

</bundles_post_ra>
